<compile_context>
chip_gen: v7x
topology: tpu7x:2x2x1
jax: 0.10.0
libtpu: 0.0.40
codegen_flags: <defaults>
</compile_context>

<pallas_src>
import jax
import jax.numpy as jnp
from jax.experimental import pallas as pl
from jax.experimental.pallas import tpu as pltpu

LANE = 128  # lane-dense padded width for all small feature dims


# --------------------------------------------------------------------------- #
# Kernels
# --------------------------------------------------------------------------- #
def _prep_kernel(x_ref, emb_ref, w1p_ref, w2_ref, b2_ref, w4ep_ref,
                 xw_ref, e2w_ref):
    """Row-tiled small matmuls (run once per node-row tile).

    xw  = X @ W1            (padded to LANE cols, stored bf16 for the A sweep)
    e2  = emb_flat @ W2 + b2            (conv2: Linear(out_embed -> 2))
    e2w = e2 @ W4e          (padded to LANE cols; the 'concat' half for conv4)
    """
    xw = jnp.dot(x_ref[...], w1p_ref[...], preferred_element_type=jnp.float32)
    xw_ref[...] = xw.astype(jnp.bfloat16)

    e2 = jnp.dot(emb_ref[...], w2_ref[...],
                 preferred_element_type=jnp.float32) + b2_ref[...]
    e2w_ref[...] = jnp.dot(e2, w4ep_ref[...], preferred_element_type=jnp.float32)


def _sweep1_kernel(a_ref, xw_ref, b1p_ref, w4hp_ref, e2w_ref, g_ref, acc_ref):
    """Sweep 1 over A: acc += A[i,k] @ XW[k]; epilogue builds g = relu(acc+b1)@W4h + e2w."""
    k = pl.program_id(1)

    @pl.when(k == 0)
    def _():
        acc_ref[...] = jnp.zeros_like(acc_ref)

    acc_ref[...] += jnp.dot(a_ref[...], xw_ref[...],
                            preferred_element_type=jnp.float32)

    @pl.when(k == pl.num_programs(1) - 1)
    def _():
        # conv1 bias + ReLU in f32 (VPU), then fold the conv4 "h-half" matmul
        # here so h never leaves VMEM.
        h = jnp.maximum(acc_ref[...] + b1p_ref[...], 0.0)
        g = jnp.dot(h, w4hp_ref[...],
                    preferred_element_type=jnp.float32) + e2w_ref[...]
        g_ref[...] = g.astype(jnp.bfloat16)


def _sweep2_kernel(a_ref, g_ref, b4p_ref, out_ref, acc_ref):
    """Sweep 2 over A: out = A @ g + b4 (lane-dense 128-wide output slab)."""
    k = pl.program_id(1)

    @pl.when(k == 0)
    def _():
        acc_ref[...] = jnp.zeros_like(acc_ref)

    acc_ref[...] += jnp.dot(a_ref[...], g_ref[...],
                            preferred_element_type=jnp.float32)

    @pl.when(k == pl.num_programs(1) - 1)
    def _():
        out_ref[...] = acc_ref[...] + b4p_ref[...]


# --------------------------------------------------------------------------- #
# Wrapper
# --------------------------------------------------------------------------- #
def gcn_forward(a_hat, in_feat, w1, b1, emb_flat, w2, b2, w4h, w4e, b4, *,
                tile=128):
    n, f = in_feat.shape
    h_feats = w1.shape[1]
    e_feats = emb_flat.shape[1]
    two = w2.shape[1]
    c = w4h.shape[1]

    # ---- pad node count to a tile multiple (zero rows/cols are inert) -------
    n_pad = pl.cdiv(n, tile) * tile
    extra = n_pad - n
    if extra:
        a_hat = jnp.pad(a_hat, ((0, extra), (0, extra)))
        in_feat = jnp.pad(in_feat, ((0, extra), (0, 0)))
        emb_flat = jnp.pad(emb_flat, ((0, extra), (0, 0)))

    # ---- bf16 adjacency in HBM: halves the dominant memory stream -----------
    a_bf = a_hat.astype(jnp.bfloat16)

    # ---- lane-dense (128-wide) zero-padded weights / biases ------------------
    b1 = b1.reshape(1, -1)
    b2 = b2.reshape(1, -1)
    b4 = b4.reshape(1, -1)
    w1p = jnp.zeros((f, LANE), jnp.float32).at[:, :h_feats].set(w1)
    b1p = jnp.zeros((1, LANE), jnp.float32).at[:, :h_feats].set(b1)
    w4hp = jnp.zeros((LANE, LANE), jnp.float32).at[:h_feats, :c].set(w4h)
    w4ep = jnp.zeros((two, LANE), jnp.float32).at[:, :c].set(w4e)
    b4p = jnp.zeros((1, LANE), jnp.float32).at[:, :c].set(b4)

    grid_rows = n_pad // tile

    # ---------------- prep: per-row small matmuls ----------------------------
    xw_bf, e2w = pl.pallas_call(
        _prep_kernel,
        out_shape=(jax.ShapeDtypeStruct((n_pad, LANE), jnp.bfloat16),
                   jax.ShapeDtypeStruct((n_pad, LANE), jnp.float32)),
        grid_spec=pltpu.PrefetchScalarGridSpec(
            num_scalar_prefetch=0,
            grid=(grid_rows,),
            in_specs=[
                pl.BlockSpec((tile, f), lambda i: (i, 0)),        # X rows
                pl.BlockSpec((tile, e_feats), lambda i: (i, 0)),  # emb rows
                pl.BlockSpec((f, LANE), lambda i: (0, 0)),        # W1 (padded)
                pl.BlockSpec((e_feats, two), lambda i: (0, 0)),   # W2
                pl.BlockSpec((1, two), lambda i: (0, 0)),         # b2
                pl.BlockSpec((two, LANE), lambda i: (0, 0)),      # W4e (padded)
            ],
            out_specs=[
                pl.BlockSpec((tile, LANE), lambda i: (i, 0)),     # XW
                pl.BlockSpec((tile, LANE), lambda i: (i, 0)),     # e2w
            ],
        ),
        compiler_params=pltpu.CompilerParams(
            dimension_semantics=("parallel",)),
        cost_estimate=pl.CostEstimate(
            flops=2 * n_pad * (f * LANE + e_feats * two + two * LANE),
            transcendentals=0,
            bytes_accessed=n_pad * (f + e_feats) * 4 + n_pad * LANE * 6),
    )(in_feat, emb_flat, w1p, w2, b2, w4ep)

    # ---------------- sweep 1: g = relu(A @ XW + b1) @ W4h + e2w --------------
    sweep_flops = 2 * n_pad * n_pad * LANE + 2 * n_pad * LANE * LANE
    sweep1_bytes = n_pad * n_pad * 2 + n_pad * LANE * (2 + 4 + 2)
    g_bf = pl.pallas_call(
        _sweep1_kernel,
        out_shape=jax.ShapeDtypeStruct((n_pad, LANE), jnp.bfloat16),
        grid_spec=pltpu.PrefetchScalarGridSpec(
            num_scalar_prefetch=0,
            grid=(grid_rows, grid_rows),
            in_specs=[
                pl.BlockSpec((tile, tile), lambda i, k: (i, k)),   # A tile (bf16)
                pl.BlockSpec((tile, LANE), lambda i, k: (k, 0)),   # XW rows (bf16)
                pl.BlockSpec((1, LANE), lambda i, k: (0, 0)),      # b1 (padded)
                pl.BlockSpec((LANE, LANE), lambda i, k: (0, 0)),   # W4h (padded)
                pl.BlockSpec((tile, LANE), lambda i, k: (i, 0)),   # e2w rows
            ],
            out_specs=pl.BlockSpec((tile, LANE), lambda i, k: (i, 0)),
            scratch_shapes=[pltpu.VMEM((tile, LANE), jnp.float32)],
        ),
        compiler_params=pltpu.CompilerParams(
            dimension_semantics=("parallel", "arbitrary")),
        cost_estimate=pl.CostEstimate(flops=sweep_flops, transcendentals=0,
                                      bytes_accessed=sweep1_bytes),
    )(a_bf, xw_bf, b1p, w4hp, e2w)

    # ---------------- sweep 2: out = A @ g + b4 -------------------------------
    sweep2_bytes = n_pad * n_pad * 2 + n_pad * LANE * (2 + 4)
    out_pad = pl.pallas_call(
        _sweep2_kernel,
        out_shape=jax.ShapeDtypeStruct((n_pad, LANE), jnp.float32),
        grid_spec=pltpu.PrefetchScalarGridSpec(
            num_scalar_prefetch=0,
            grid=(grid_rows, grid_rows),
            in_specs=[
                pl.BlockSpec((tile, tile), lambda i, k: (i, k)),   # A tile (bf16)
                pl.BlockSpec((tile, LANE), lambda i, k: (k, 0)),   # g rows (bf16)
                pl.BlockSpec((1, LANE), lambda i, k: (0, 0)),      # b4 (padded)
            ],
            out_specs=pl.BlockSpec((tile, LANE), lambda i, k: (i, 0)),
            scratch_shapes=[pltpu.VMEM((tile, LANE), jnp.float32)],
        ),
        compiler_params=pltpu.CompilerParams(
            dimension_semantics=("parallel", "arbitrary")),
        cost_estimate=pl.CostEstimate(flops=2 * n_pad * n_pad * LANE,
                                      transcendentals=0,
                                      bytes_accessed=sweep2_bytes),
    )(a_bf, g_bf, b4p)

    # lane-dense slab -> real output (slice off class / row padding outside).
    return out_pad[:n, :c]


# --------------------------------------------------------------------------- #
# Pure-JAX references
# --------------------------------------------------------------------------- #
def reference_forward(a_hat, x, w1, b1, emb_flat, w2, b2, w4h, w4e, b4):
    h = jnp.maximum(a_hat @ (x @ w1) + b1, 0.0)
    e2 = emb_flat @ w2 + b2
    hcat = jnp.concatenate([h, e2], axis=1)
    w4 = jnp.concatenate([w4h, w4e], axis=0)
    return a_hat @ (hcat @ w4) + b4


if __name__ == "__main__":
    # Small shapes consistent with the module, but large enough to exercise the
    # (row, k) grid: 256 nodes -> 2x2 tiles of 128.
    N = 256
    IN_FEATS = 32      # node feature dim (also the Embedding vocab size)
    H_FEATS = 8
    NUM_CLASSES = 4
    SEQ = 4            # encoder_input_data sequence length
    OUT_EMBED = SEQ * H_FEATS   # nn.Flatten(start_dim=1) output width

    key = jax.random.PRNGKey(0)
    keys = jax.random.split(key, 10)

    # --- graph: random undirected adjacency, symmetric norm D^-1/2 A D^-1/2 ---
    upper = (jax.random.uniform(keys[0], (N, N)) < 0.1).astype(jnp.float32)
    upper = jnp.triu(upper, k=1)
    adj = upper + upper.T
    deg = adj.sum(axis=1)
    d_inv_sqrt = jnp.where(deg > 0, 1.0 / jnp.sqrt(jnp.maximum(deg, 1e-12)), 0.0)
    a_hat = (d_inv_sqrt[:, None] * adj) * d_inv_sqrt[None, :]

    # --- inputs ---
    in_feat = jax.random.normal(keys[1], (N, IN_FEATS), dtype=jnp.float32)
    encoder_input_data = jax.random.randint(keys[2], (N, SEQ), 0, IN_FEATS)

    # --- parameters (shapes mirror the PyTorch module, weights stored [in,out]) ---
    w1 = 0.1 * jax.random.normal(keys[3], (IN_FEATS, H_FEATS), dtype=jnp.float32)
    b1 = jnp.zeros((H_FEATS,), dtype=jnp.float32)
    embed_table = 0.1 * jax.random.normal(keys[4], (IN_FEATS, H_FEATS), dtype=jnp.float32)
    w2 = 0.1 * jax.random.normal(keys[5], (OUT_EMBED, 2), dtype=jnp.float32)
    b2 = 0.1 * jax.random.normal(keys[6], (2,), dtype=jnp.float32)
    w4 = 0.1 * jax.random.normal(keys[7], (H_FEATS + 2, NUM_CLASSES), dtype=jnp.float32)
    b4 = jnp.zeros((NUM_CLASSES,), dtype=jnp.float32)
    w4h, w4e = w4[:H_FEATS], w4[H_FEATS:]

    # --- glue: embedding gather + flatten (nn.Embedding + nn.Flatten) ---
    emb_flat = jnp.take(embed_table, encoder_input_data, axis=0).reshape(N, OUT_EMBED)

    out = gcn_forward(a_hat, in_feat, w1, b1, emb_flat, w2, b2, w4h, w4e, b4,
                      tile=128)
    out = jax.block_until_ready(out)

    ref = reference_forward(a_hat, in_feat, w1, b1, emb_flat, w2, b2, w4h, w4e, b4)
    assert out.shape == (N, NUM_CLASSES)
    # bf16-streamed A / XW / g with f32 accumulation -> small, bounded deviation
    # from the all-f32 reference.
    assert jnp.allclose(out, ref, atol=5e-3, rtol=5e-2), "mismatch vs JAX reference"

    print("KERNEL_OK")
</pallas_src>

<mosaic_0001>
module attributes {stable_mosaic.version = 11 : i64} {
  func.func @_prep_kernel(%arg0: i32, %arg1: memref<128x32xf32, #tpu.memory_space<vmem>>, %arg2: memref<128x32xf32, #tpu.memory_space<vmem>>, %arg3: memref<32x128xf32, #tpu.memory_space<vmem>>, %arg4: memref<32x2xf32, #tpu.memory_space<vmem>>, %arg5: memref<1x2xf32, #tpu.memory_space<vmem>>, %arg6: memref<2x128xf32, #tpu.memory_space<vmem>>, %arg7: memref<128x128xbf16, #tpu.memory_space<vmem>>, %arg8: memref<128x128xf32, #tpu.memory_space<vmem>>) attributes {dimension_semantics = [#tpu.dimension_semantics<parallel>], iteration_bounds = array<i64: 2>, scalar_prefetch = 0 : i64, scratch_operands = 0 : i64, tpu.core_type = #tpu.core_type<tc>, window_params = [{transform_indices = @transform_0, window_bounds = array<i64: 128, 32>}, {transform_indices = @transform_1, window_bounds = array<i64: 128, 32>}, {pipeline_mode = #tpu.pipeline_mode<synchronous>, transform_indices = @transform_2, window_bounds = array<i64: 32, 128>}, {pipeline_mode = #tpu.pipeline_mode<synchronous>, transform_indices = @transform_3, window_bounds = array<i64: 32, 2>}, {pipeline_mode = #tpu.pipeline_mode<synchronous>, transform_indices = @transform_4, window_bounds = array<i64: 1, 2>}, {pipeline_mode = #tpu.pipeline_mode<synchronous>, transform_indices = @transform_5, window_bounds = array<i64: 2, 128>}, {transform_indices = @transform_6, window_bounds = array<i64: 128, 128>}, {transform_indices = @transform_7, window_bounds = array<i64: 128, 128>}]} {
    %c0 = arith.constant 0 : index
    %c0_0 = arith.constant 0 : index
    %0 = vector.load %arg1[%c0, %c0_0] : memref<128x32xf32, #tpu.memory_space<vmem>>, vector<128x32xf32>
    %c0_1 = arith.constant 0 : index
    %c0_2 = arith.constant 0 : index
    %1 = vector.load %arg3[%c0_1, %c0_2] : memref<32x128xf32, #tpu.memory_space<vmem>>, vector<32x128xf32>
    %cst = arith.constant dense<0.000000e+00> : vector<128x128xf32>
    %2 = tpu.matmul %0, %1, %cst {dimension_numbers = #tpu.dot_dimension_numbers<[1], [0], [0], [1], [0, 0, 1, 1], [], []>} : vector<128x32xf32>, vector<32x128xf32>, vector<128x128xf32> -> vector<128x128xf32>
    %3 = arith.truncf %2 : vector<128x128xf32> to vector<128x128xbf16>
    %c0_3 = arith.constant 0 : index
    %c0_4 = arith.constant 0 : index
    %4 = vector.load %arg7[%c0_3, %c0_4] : memref<128x128xbf16, #tpu.memory_space<vmem>>, vector<128x128xbf16>
    tpu.vector_store %arg7[%c0_3, %c0_4], %3 {strides = array<i32>} : memref<128x128xbf16, #tpu.memory_space<vmem>>, vector<128x128xbf16>,
    %c0_5 = arith.constant 0 : index
    %c0_6 = arith.constant 0 : index
    %5 = vector.load %arg2[%c0_5, %c0_6] : memref<128x32xf32, #tpu.memory_space<vmem>>, vector<128x32xf32>
    %c0_7 = arith.constant 0 : index
    %c0_8 = arith.constant 0 : index
    %6 = vector.load %arg4[%c0_7, %c0_8] : memref<32x2xf32, #tpu.memory_space<vmem>>, vector<32x2xf32>
    %cst_9 = arith.constant dense<0.000000e+00> : vector<128x2xf32>
    %7 = tpu.matmul %5, %6, %cst_9 {dimension_numbers = #tpu.dot_dimension_numbers<[1], [0], [0], [1], [0, 0, 1, 1], [], []>} : vector<128x32xf32>, vector<32x2xf32>, vector<128x2xf32> -> vector<128x2xf32>
    %c0_10 = arith.constant 0 : index
    %c0_11 = arith.constant 0 : index
    %8 = vector.load %arg5[%c0_10, %c0_11] : memref<1x2xf32, #tpu.memory_space<vmem>>, vector<1x2xf32>
    %9 = vector.broadcast %8 : vector<1x2xf32> to vector<128x2xf32>
    %10 = arith.addf %7, %9 : vector<128x2xf32>
    %c0_12 = arith.constant 0 : index
    %c0_13 = arith.constant 0 : index
    %11 = vector.load %arg6[%c0_12, %c0_13] : memref<2x128xf32, #tpu.memory_space<vmem>>, vector<2x128xf32>
    %cst_14 = arith.constant dense<0.000000e+00> : vector<128x128xf32>
    %12 = tpu.matmul %10, %11, %cst_14 {dimension_numbers = #tpu.dot_dimension_numbers<[1], [0], [0], [1], [0, 0, 1, 1], [], []>} : vector<128x2xf32>, vector<2x128xf32>, vector<128x128xf32> -> vector<128x128xf32>
    %c0_15 = arith.constant 0 : index
    %c0_16 = arith.constant 0 : index
    %13 = vector.load %arg8[%c0_15, %c0_16] : memref<128x128xf32, #tpu.memory_space<vmem>>, vector<128x128xf32>
    tpu.vector_store %arg8[%c0_15, %c0_16], %12 {strides = array<i32>} : memref<128x128xf32, #tpu.memory_space<vmem>>, vector<128x128xf32>,
    return
  }
  func.func @transform_0(%arg0: i32) -> (i32, i32) {
    %c0_i32 = arith.constant 0 : i32
    %c0_i32_0 = arith.constant 0 : i32
    return %arg0, %c0_i32 : i32, i32
  }
  func.func @transform_1(%arg0: i32) -> (i32, i32) {
    %c0_i32 = arith.constant 0 : i32
    %c0_i32_0 = arith.constant 0 : i32
    return %arg0, %c0_i32 : i32, i32
  }
  func.func @transform_2(%arg0: i32) -> (i32, i32) {
    %c0_i32 = arith.constant 0 : i32
    %c0_i32_0 = arith.constant 0 : i32
    %c0_i32_1 = arith.constant 0 : i32
    return %c0_i32, %c0_i32_0 : i32, i32
  }
  func.func @transform_3(%arg0: i32) -> (i32, i32) {
    %c0_i32 = arith.constant 0 : i32
    %c0_i32_0 = arith.constant 0 : i32
    %c0_i32_1 = arith.constant 0 : i32
    return %c0_i32, %c0_i32_0 : i32, i32
  }
  func.func @transform_4(%arg0: i32) -> (i32, i32) {
    %c0_i32 = arith.constant 0 : i32
    %c0_i32_0 = arith.constant 0 : i32
    %c0_i32_1 = arith.constant 0 : i32
    return %c0_i32, %c0_i32_0 : i32, i32
  }
  func.func @transform_5(%arg0: i32) -> (i32, i32) {
    %c0_i32 = arith.constant 0 : i32
    %c0_i32_0 = arith.constant 0 : i32
    %c0_i32_1 = arith.constant 0 : i32
    return %c0_i32, %c0_i32_0 : i32, i32
  }
  func.func @transform_6(%arg0: i32) -> (i32, i32) {
    %c0_i32 = arith.constant 0 : i32
    %c0_i32_0 = arith.constant 0 : i32
    return %arg0, %c0_i32 : i32, i32
  }
  func.func @transform_7(%arg0: i32) -> (i32, i32) {
    %c0_i32 = arith.constant 0 : i32
    %c0_i32_0 = arith.constant 0 : i32
    return %arg0, %c0_i32 : i32, i32
  }
}

</mosaic_0001>

<bundles_post_ra>
// kernel: tpu_custom_call.1
= control target key start
LH: loop header
LB: loop body
LE: loop exit
PB: predicated region body
PF: predicated region fallthrough
CT: control target
= control target key end

     0   :  { %13 = vsyncpa [#allocation3], 0  ;;  %s1978_s0 = inlined_call_operand.vmem [shape: f32[256,32], index: 0, kind: input, shape index: {}]   ;;  %s1979_s1 = inlined_call_operand.vmem [shape: f32[256,32], index: 1, kind: input, shape index: {}]   ;;  %s1980_s2 = inlined_call_operand.vmem [shape: f32[32,128], index: 2, kind: input, shape index: {}]   ;;  %s1981_s3 = inlined_call_operand.vmem [shape: f32[32,2], index: 3, kind: input, shape index: {}]   ;;  %s1982_s4 = inlined_call_operand.vmem [shape: f32[1,2], index: 4, kind: input, shape index: {}]   ;;  %s1983_s5 = inlined_call_operand.vmem [shape: f32[2,128], index: 5, kind: input, shape index: {}]   ;;  %s1984_s6 = inlined_call_operand.hbm [shape: bf16[256,128], index: 6, kind: output, shape index: {0}]   ;;  %s1985_s7 = inlined_call_operand.hbm [shape: f32[256,128], index: 7, kind: output, shape index: {1}]  }
   0x1   :  { %15 = vsyncpa [#allocation3 + $0x1], 0 }
   0x2   :  { %16 = vsyncpa [#allocation5], 0 }
   0x3   :  { %18 = vsyncpa [#allocation5 + $0x1], 0  ;;  %s1690_s24 = smov 0   ;;  %s1692_s25 = smov 0  }
   0x4   :  { %s1694_s26 = smov 0   ;;  %s1696_s27 = smov 0  }
   0x5 LB: > { %s1711_s28 = sadd.s32 4294967295, %s1642_s27   ;;  %s1184_s29 = sadd.s32 4294967294, %s1642_s27   ;;  %s1642_s27 = sphi %s1696_s27, %s1991_s27   ;;  %s1638_s26 = sphi %s1694_s26, %s1990_s26   ;;  %s1634_s25 = sphi %s1692_s25, %s1989_s25   ;;  %s1630_s24 = sphi %s1690_s24, %s1988_s24  }
   0x6   : > { %s1715_s30 = sadd.s32 1, %s1642_s27   ;;  %s167_s8 = sadd.s32 1, %s1638_s26 }
   0x7   : > { %s164_s9 = ssub.s32 %s1642_s27, %s1715_s30  ;;  %p177_p0 = scmp.ne.s32.totalorder %s1638_s26, %s1634_s25 }
   0x8   : > { %p165_p1 = scmp.eq.s32.totalorder %s164_s9, 0  ;;  %p178_p2 = scmp.eq.s32.totalorder %s1711_s28, 1 }
   0x9   : > { %p183_p3 = scmp.ne.s32.totalorder %s1634_s25, %s1630_s24  ;;  %p184_p4 = scmp.eq.s32.totalorder %s1184_s29, 1 }
   0xa   : > { %s1726_s10 = scalar_select %p165_p1, %s1638_s26, %s167_s8  }
   0xb   : > { %p1728_p5 = por %p178_p2, %p177_p0  ;;  %p1732_p6 = por %p184_p4, %p183_p3 }
   0xc   : > { %p1187_p7 = scmp.ge.s32.totalorder %s1642_s27, 1  ;;  %p258_p8 = scmp.lt.s32.totalorder %s1642_s27, 3 }
   0xe   : > { %p259_p9 = pnand %p1187_p7, %p258_p8 }
   0xf   : > { %v330_v0 = vld [vmem:[%s1980_s2] sm:$0xff] (!%p259_p9)  ;;  %v331_v1 = vld [vmem:[%s1980_s2 + $0x8] sm:$0xff] (!%p259_p9)  ;;  %v332_v2 = vld [vmem:[%s1980_s2 + $0x10] sm:$0xff] (!%p259_p9)  ;;  %s1190_s19 = sshll.u32 (!%p259_p9), %s1711_s28, 4  ;;  %vm334_vm0 = vcmask (!%p259_p9), 261120   ;;  %vm878_vm1 = vcmask (!%p259_p9), 1041408  }
  0x10   : > { %262 = sbr.rel (%p259_p9) target bundleno = 516 (0x204), region = 44  ;;  %v1480_v3 = vpack.c.bf16 (!%p259_p9), %v331_v1, %v330_v0  ;;  %v333_v4 = vld [vmem:[%s1980_s2 + $0x18] sm:$0xff] (!%p259_p9)  ;;  %p301_p10 = scmp.lt.s32.totalorder (!%p259_p9), %s1190_s19, 31  ;;  %v624_v6 = vld [vmem:[%s1981_s3] sm:$0xff] (!%p259_p9)  ;;  %v625_v7 = vld [vmem:[%s1981_s3 + $0x8] sm:$0xff] (!%p259_p9)  ;;  %vm829_vm2 = vcmask (!%p259_p9), 15360  }
  0x11   : > { %v1484_v5 = vpack.c.bf16 (!%p259_p9), %v333_v4, %v332_v2  ;;  %v1488_v8 = vpack.c.bf16 (!%p259_p9), %v625_v7, %v624_v6  ;;  %v626_v9 = vld [vmem:[%s1981_s3 + $0x10] sm:$0xff] (!%p259_p9)  ;;  %v627_v10 = vld [vmem:[%s1981_s3 + $0x18] sm:$0xff] (!%p259_p9)  ;;  %v828_v40 = vld [vmem:[%s1983_s5] sm:$0x3] (!%p259_p9)  ;;  %s1844_s8 = sand.u32 (!%p259_p9), 1, %s1634_s25   ;;  %s1284_s16 = sshll.u32 (!%p259_p9), %s1711_s28, 10 }
  0x12   : > { %1496 = vmatprep.subr.bf16.mxu1 (!%p259_p9), %v1480_v3  ;;  %1481 = vmatprep.subr.bf16.mxu0 (!%p259_p9), %v1480_v3  ;;  %v1492_v14 = vpack.c.bf16 (!%p259_p9), %v627_v10, %v626_v9  ;;  %v1226_v57 = vld [vmem:[%s1982_s4] ss:$0 sm:$0xff] (!%p259_p9)  ;;  %s1044_s21 = scalar_lea.sflag (!%p259_p9), [#allocation3], %s1844_s8  ;;  %s1644_s23 = smov (!%p259_p9), [#allocation2]  }
  0x13   : > { %1498 = vmatpush3.bf16.msra.mxu1 (!%p259_p9), %v1480_v3  ;;  %1483 = vmatpush3.bf16.msra.mxu0 (!%p259_p9), %v1480_v3  ;;  %s1552_s29 = sshll.u32 (!%p259_p9), %s1644_s23, 4  ;;  %s1553_s29 = int_to_ptr.vmem [resolvable:$false] %s1552_s29 }
  0x14   : > { %1497 = vmatprep.subr.bf16.mxu1 (!%p259_p9), %v1484_v5  ;;  %1485 = vmatprep.subr.bf16.mxu0 (!%p259_p9), %v1484_v5 }
  0x17   : > { %s1993_s19 = smov (!%p301_p10, %s1190_s19), 31  ;;  %1499 = vmatpush3.bf16.msra.mxu1 %v1484_v5  ;;  %1487 = vmatpush3.bf16.msra.mxu0 %v1484_v5 }
  0x18   : > { %s1191_s9 = sshll.u32 %s1993_s19, 3  ;;  %1489 = vmatprep.subr.bf16.mxu1 %v1488_v8  ;;  %1454 = vmatprep.subr.msk.mxu0 %vm878_vm1, %v828_v40  ;;  %s1881_s19 = scalar_lea.hbm %s1984_s6, %s1284_s16 }
  0x19   : > { %s1763_s15 = scalar_lea.vmem %s1978_s0, %s1191_s9  ;;  %s1786_s22 = scalar_lea.vmem %s1979_s1, %s1191_s9 }
  0x1a   : > { %v322_v11 = vld [vmem:[%s1763_s15 + $0x40] sm:$0xff]  ;;  %v323_v12 = vld [vmem:[%s1763_s15 + $0x48] sm:$0xff]  ;;  %v324_v13 = vld [vmem:[%s1763_s15 + $0x50] sm:$0xff]  ;;  %s1188_s9 = sshll.u32 %s1844_s8, 6 }
  0x1b   : > { %1410 = vmatprep.mubr.msk.f32.mxu1 %vm334_vm0, %v322_v11  ;;  %v325_v15 = vld [vmem:[%s1763_s15 + $0x58] sm:$0xff]  ;;  %v326_v16 = vld [vmem:[%s1763_s15 + $0x60] sm:$0xff]  ;;  %v327_v17 = vld [vmem:[%s1763_s15 + $0x68] sm:$0xff]  ;;  %s1847_s13 = scalar_lea.vmem [#allocation2], %s1188_s9  ;;  %s1554_s9 = scalar_lea.vmem %s1553_s29, 2048 }
  0x1c   : > { %1411 = vmatmul.mubr.msk.f32.vlgmr.msra.gmra.mrb[0].mxu1 %vm334_vm0, %v323_v12  ;;  %v328_v18 = vld [vmem:[%s1763_s15 + $0x70] sm:$0xff]  ;;  %v329_v19 = vld [vmem:[%s1763_s15 + $0x78] sm:$0xff]  ;;  %v608_v20 = vld [vmem:[%s1786_s22] sm:$0xff]  ;;  %s1062_s17 = sshll.u32 %s1847_s13, 4  ;;  %s1883_s17 = int_to_ptr.vmem [resolvable:$true] %s1062_s17 }
  0x1d   : > { %1491 = vmatpush3.bf16.msra.mxu1 %v1488_v8  ;;  %1413 = vmatprep.mubr.msk.f32.mxu1 %vm334_vm0, %v324_v13  ;;  %v609_v21 = vld [vmem:[%s1786_s22 + $0x8] sm:$0xff]  ;;  %v610_v22 = vld [vmem:[%s1786_s22 + $0x10] sm:$0xff]  ;;  %v611_v23 = vld [vmem:[%s1786_s22 + $0x18] sm:$0xff]  ;;  %p1555_p0 = scmp.lt.s32.totalorder %s1883_s17, %s1553_s29 }
  0x1e   : > { %1493 = vmatprep.subr.bf16.mxu1 %v1492_v14  ;;  %v612_v24 = vld [vmem:[%s1786_s22 + $0x20] sm:$0xff]  ;;  %v613_v25 = vld [vmem:[%s1786_s22 + $0x28] sm:$0xff]  ;;  %v614_v26 = vld [vmem:[%s1786_s22 + $0x30] sm:$0xff] }
  0x1f   : > { %v615_v27 = vld [vmem:[%s1786_s22 + $0x38] sm:$0xff]  ;;  %v616_v28 = vld [vmem:[%s1786_s22 + $0x40] sm:$0xff]  ;;  %v617_v29 = vld [vmem:[%s1786_s22 + $0x48] sm:$0xff] }
  0x20   : > { %1414 = vmatmul.mubr.msk.f32.gmra.mrb[2].mxu1 %vm334_vm0, %v325_v15  ;;  %v618_v30 = vld [vmem:[%s1786_s22 + $0x50] sm:$0xff]  ;;  %v619_v31 = vld [vmem:[%s1786_s22 + $0x58] sm:$0xff]  ;;  %v620_v32 = vld [vmem:[%s1786_s22 + $0x60] sm:$0xff] }
  0x21   : > { %1416 = vmatprep.mubr.msk.f32.mxu1 %vm334_vm0, %v326_v16  ;;  %1495 = vmatpush3.bf16.msra.mxu1 %v1492_v14  ;;  %v621_v33 = vld [vmem:[%s1786_s22 + $0x68] sm:$0xff]  ;;  %v622_v34 = vld [vmem:[%s1786_s22 + $0x70] sm:$0xff]  ;;  %v623_v35 = vld [vmem:[%s1786_s22 + $0x78] sm:$0xff]  ;;  %s1548_s22 = scalar_lea.vmem %s1883_s17, 1024 }
  0x22   : > { %v314_v36 = vld [vmem:[%s1763_s15] sm:$0xff]  ;;  %v315_v37 = vld [vmem:[%s1763_s15 + $0x8] sm:$0xff]  ;;  %v316_v38 = vld [vmem:[%s1763_s15 + $0x10] sm:$0xff]  ;;  %p1549_p11 = scmp.ne.s32.totalorder %s1883_s17, %s1548_s22  ;;  %p1556_p1 = scmp.lt.s32.totalorder %s1554_s9, %s1548_s22 }
  0x23   : > { %1398 = vmatprep.mubr.msk.f32.mxu0 %vm334_vm0, %v314_v36  ;;  %v317_v39 = vld [vmem:[%s1763_s15 + $0x18] sm:$0xff]  ;;  %v318_v41 = vld [vmem:[%s1763_s15 + $0x20] sm:$0xff]  ;;  %v319_v42 = vld [vmem:[%s1763_s15 + $0x28] sm:$0xff] }
  0x24   : > { %1417 = vmatmul.mubr.msk.f32.gmra.mrb[4].mxu1 %vm334_vm0, %v327_v17  ;;  %1399 = vmatmul.mubr.msk.f32.vlgmr.msra.gmra.mrb[0].mxu0 %vm334_vm0, %v315_v37  ;;  %v320_v43 = vld [vmem:[%s1763_s15 + $0x30] sm:$0xff]  ;;  %v321_v44 = vld [vmem:[%s1763_s15 + $0x38] sm:$0xff]  ;;  %p1550_p12 = pnand %p1549_p11, %p1728_p5  ;;  %p1557_p2 = por %p1556_p1, %p1555_p0 }
  0x25   : > { %1419 = vmatprep.mubr.msk.f32.mxu1 %vm334_vm0, %v328_v18  ;;  %1401 = vmatprep.mubr.msk.f32.mxu0 %vm334_vm0, %v316_v38 }
  0x26   : > { %1455 = vmatpush3.msk.msra.mxu0 %vm878_vm1, %v828_v40  ;;  %p1551_p13 = pneg %p1550_p12 }
  0x28   : > { %1420 = vmatmul.mubr.msk.f32.gmra.mrb[6].mxu1 %vm334_vm0, %v329_v19  ;;  %1402 = vmatmul.mubr.msk.f32.gmra.mrb[2].mxu0 %vm334_vm0, %v317_v39  ;;  %p1558_p3 = pnand %p1557_p2, %p1551_p13 }
  0x29   : > { %1430 = vmatprep.mubr.msk.f32.mxu1 %vm334_vm0, %v608_v20  ;;  %1404 = vmatprep.mubr.msk.f32.mxu0 %vm334_vm0, %v318_v41 }
  0x2c   : > { %1431 = vmatmul.mubr.msk.f32.vlgmr.msra.gmra.mrb[8].mxu1 %vm334_vm0, %v609_v21  ;;  %1405 = vmatmul.mubr.msk.f32.gmra.mrb[4].mxu0 %vm334_vm0, %v319_v42 }
  0x2d   : > { %1433 = vmatprep.mubr.msk.f32.mxu1 %vm334_vm0, %v610_v22  ;;  %1407 = vmatprep.mubr.msk.f32.mxu0 %vm334_vm0, %v320_v43 }
  0x30   : > { %1434 = vmatmul.mubr.msk.f32.gmra.mrb[10].mxu1 %vm334_vm0, %v611_v23  ;;  %1408 = vmatmul.mubr.msk.f32.gmra.mrb[6].mxu0 %vm334_vm0, %v321_v44 }
  0x31   : > { %1436 = vmatprep.mubr.msk.f32.mxu1 %vm334_vm0, %v612_v24 }
  0x34   : > { %1437 = vmatmul.mubr.msk.f32.gmra.mrb[12].mxu1 %vm334_vm0, %v613_v25 }
  0x35   : > { %1439 = vmatprep.mubr.msk.f32.mxu1 %vm334_vm0, %v614_v26 }
  0x38   : > { %1440 = vmatmul.mubr.msk.f32.gmra.mrb[14].mxu1 %vm334_vm0, %v615_v27 }
  0x39   : > { %1442 = vmatprep.mubr.msk.f32.mxu1 %vm334_vm0, %v616_v28 }
  0x3c   : > { %1443 = vmatmul.mubr.msk.f32.gmra.mrb[16].mxu1 %vm334_vm0, %v617_v29 }
  0x3d   : > { %1445 = vmatprep.mubr.msk.f32.mxu1 %vm334_vm0, %v618_v30 }
  0x40   : > { %1446 = vmatmul.mubr.msk.f32.gmra.mrb[18].mxu1 %vm334_vm0, %v619_v31 }
  0x41   : > { %1448 = vmatprep.mubr.msk.f32.mxu1 %vm334_vm0, %v620_v32 }
  0x44   : > { %1449 = vmatmul.mubr.msk.f32.gmra.mrb[20].mxu1 %vm334_vm0, %v621_v33 }
  0x45   : > { %1451 = vmatprep.mubr.msk.f32.mxu1 %vm334_vm0, %v622_v34 }
  0x48   : > { %1452 = vmatmul.mubr.msk.f32.gmra.mrb[22].mxu1 %vm334_vm0, %v623_v35 }
  0xef   : > { %v1412_v45 = vpop.f32.mrb[0].mxu1 }
  0xf0   : > { %v489_v46 = vpop.f32.mrb[1].mxu1 }
  0xf1   : > { %v1309_v47 = vpack.c.bf16 %v1412_v45, %v489_v46 }
  0xf3   : > { %1329 = vst [vmem:[%s1847_s13 + $0x20] sm:$0xff] %v1309_v47   ;;  %v1415_v48 = vpop.f32.mrb[2].mxu1 }
  0xf4   : > { %v499_v49 = vpop.f32.mrb[3].mxu1 }
  0xf5   : > { %v1314_v50 = vpack.c.bf16 %v1415_v48, %v499_v49 }
  0xf7   : > { %1330 = vst [vmem:[%s1847_s13 + $0x28] sm:$0xff] %v1314_v50   ;;  %v1418_v51 = vpop.f32.mrb[4].mxu1  ;;  %v1400_v26 = vpop.f32.mrb[0].mxu0 }
  0xf8   : > { %v509_v52 = vpop.f32.mrb[5].mxu1  ;;  %v449_v27 = vpop.f32.mrb[1].mxu0 }
  0xf9   : > { %v1319_v53 = vpack.c.bf16 %v1418_v51, %v509_v52  ;;  %v1289_v28 = vpack.c.bf16 %v1400_v26, %v449_v27 }
  0xfb   : > { %1331 = vst [vmem:[%s1847_s13 + $0x30] sm:$0xff] %v1319_v53   ;;  %v1421_v54 = vpop.f32.mrb[6].mxu1  ;;  %1290 = vst [vmem:[%s1847_s13] sm:$0xff] %v1289_v28   ;;  %v1403_v29 = vpop.f32.mrb[2].mxu0 }
  0xfc   : > { %v519_v55 = vpop.f32.mrb[7].mxu1  ;;  %v459_v30 = vpop.f32.mrb[3].mxu0 }
  0xfd   : > { %v1324_v56 = vpack.c.bf16 %v1421_v54, %v519_v55  ;;  %v1294_v31 = vpack.c.bf16 %v1403_v29, %v459_v30 }
  0xff   : > { %1332 = vst [vmem:[%s1847_s13 + $0x38] sm:$0xff] %v1324_v56   ;;  %v1432_v58 = vpop.f32.mrb[8].mxu1  ;;  %1326 = vst [vmem:[%s1847_s13 + $0x8] sm:$0xff] %v1294_v31   ;;  %v1406_v32 = vpop.f32.mrb[4].mxu0 }
 0x100   : > { %v749_v59 = vpop.f32.mrb[9].mxu1  ;;  %v755_v61 = vadd.f32 %v1432_v58, %v1226_v57  ;;  %v469_v33 = vpop.f32.mrb[5].mxu0 }
 0x101   : > { %v750_v60 = vadd.f32 %v1226_v57, %v749_v59  ;;  %v1299_v34 = vpack.c.bf16 %v1406_v32, %v469_v33 }
 0x103   : > { %v1435_v62 = vpop.f32.mrb[10].mxu1  ;;  %1456 = vmatprep.mubr.msk.f32.mxu0 %vm829_vm2, %v750_v60  ;;  %1327 = vst [vmem:[%s1847_s13 + $0x10] sm:$0xff] %v1299_v34   ;;  %v1409_v35 = vpop.f32.mrb[6].mxu0 }
 0x104   : > { %v759_v63 = vpop.f32.mrb[11].mxu1  ;;  %1457 = vmatmul.mubr.msk.f32.vlgmr.msra.gmra.mrb[8].mxu0 %vm829_vm2, %v755_v61  ;;  %v765_v1 = vadd.f32 %v1435_v62, %v1226_v57  ;;  %v479_v36 = vpop.f32.mrb[7].mxu0 }
 0x105   : > { %v760_v0 = vadd.f32 %v1226_v57, %v759_v63  ;;  %v1304_v37 = vpack.c.bf16 %v1409_v35, %v479_v36 }
 0x107   : > { %v1438_v2 = vpop.f32.mrb[12].mxu1  ;;  %1459 = vmatprep.mubr.msk.f32.mxu0 %vm829_vm2, %v760_v0  ;;  %1328 = vst [vmem:[%s1847_s13 + $0x18] sm:$0xff] %v1304_v37  }
 0x108   : > { %v769_v3 = vpop.f32.mrb[13].mxu1  ;;  %1460 = vmatmul.mubr.msk.f32.gmra.mrb[10].mxu0 %vm829_vm2, %v765_v1  ;;  %v775_v5 = vadd.f32 %v1438_v2, %v1226_v57 }
 0x109   : > { %v770_v4 = vadd.f32 %v1226_v57, %v769_v3 }
 0x10b   : > { %v1441_v6 = vpop.f32.mrb[14].mxu1  ;;  %1462 = vmatprep.mubr.msk.f32.mxu0 %vm829_vm2, %v770_v4 }
 0x10c   : > { %v779_v7 = vpop.f32.mrb[15].mxu1  ;;  %1463 = vmatmul.mubr.msk.f32.gmra.mrb[12].mxu0 %vm829_vm2, %v775_v5  ;;  %v785_v9 = vadd.f32 %v1441_v6, %v1226_v57 }
 0x10d   : > { %v780_v8 = vadd.f32 %v1226_v57, %v779_v7 }
 0x10f   : > { %v1444_v10 = vpop.f32.mrb[16].mxu1  ;;  %1465 = vmatprep.mubr.msk.f32.mxu0 %vm829_vm2, %v780_v8 }
 0x110   : > { %v789_v11 = vpop.f32.mrb[17].mxu1  ;;  %1466 = vmatmul.mubr.msk.f32.gmra.mrb[14].mxu0 %vm829_vm2, %v785_v9  ;;  %v795_v13 = vadd.f32 %v1444_v10, %v1226_v57 }
 0x111   : > { %v790_v12 = vadd.f32 %v1226_v57, %v789_v11 }
 0x113   : > { %v1447_v14 = vpop.f32.mrb[18].mxu1  ;;  %1468 = vmatprep.mubr.msk.f32.mxu0 %vm829_vm2, %v790_v12 }
 0x114   : > { %v799_v15 = vpop.f32.mrb[19].mxu1  ;;  %1469 = vmatmul.mubr.msk.f32.gmra.mrb[16].mxu0 %vm829_vm2, %v795_v13  ;;  %v805_v17 = vadd.f32 %v1447_v14, %v1226_v57 }
 0x115   : > { %v800_v16 = vadd.f32 %v1226_v57, %v799_v15 }
 0x117   : > { %v1450_v18 = vpop.f32.mrb[20].mxu1  ;;  %1471 = vmatprep.mubr.msk.f32.mxu0 %vm829_vm2, %v800_v16 }
 0x118   : > { %v809_v19 = vpop.f32.mrb[21].mxu1  ;;  %1472 = vmatmul.mubr.msk.f32.gmra.mrb[18].mxu0 %vm829_vm2, %v805_v17  ;;  %v815_v21 = vadd.f32 %v1450_v18, %v1226_v57 }
 0x119   : > { %v810_v20 = vadd.f32 %v1226_v57, %v809_v19 }
 0x11b   : > { %v1453_v22 = vpop.f32.mrb[22].mxu1  ;;  %1474 = vmatprep.mubr.msk.f32.mxu0 %vm829_vm2, %v810_v20 }
 0x11c   : > { %v819_v23 = vpop.f32.mrb[23].mxu1  ;;  %1475 = vmatmul.mubr.msk.f32.gmra.mrb[20].mxu0 %vm829_vm2, %v815_v21  ;;  %v825_v25 = vadd.f32 %v1453_v22, %v1226_v57 }
 0x11d   : > { %v820_v24 = vadd.f32 %v1226_v57, %v819_v23 }
 0x11f   : > { %1477 = vmatprep.mubr.msk.f32.mxu0 %vm829_vm2, %v820_v24 }
 0x120   : > { %1478 = vmatmul.mubr.msk.f32.gmra.mrb[22].mxu0 %vm829_vm2, %v825_v25 }
 0x121   : > { %1561 = shalt.err (!%p1558_p3)
}
 0x122   : > { %s1562_s13 = scalar_lea.hbm %s1881_s19, 1024  ;;  %s1566_s16 = scalar_lea.hbm %s1984_s6, 2048 }
 0x123   : > { %p1563_p4 = scmp.ne.s32.totalorder %s1881_s19, %s1562_s13  ;;  %p1567_p9 = scmp.lt.u32.totalorder %s1881_s19, %s1984_s6 }
 0x124   : > { %p1568_p10 = scmp.lt.u32.totalorder %s1566_s16, %s1562_s13  ;;  %p1570_p12 = scmp.lt.u32.totalorder %s1562_s13, %s1881_s19 }
 0x125   : > { %p1564_p7 = pnand %p1563_p4, %p1728_p5 }
 0x126   : > { %p1569_p11 = por %p1568_p10, %p1567_p9 }
 0x127   : > { %p1565_p8 = pneg %p1564_p7 }
 0x128   : > { %p1571_p13 = por %p1570_p12, %p1569_p11 }
 0x12a   : > { %p1572_p0 = pnand %p1571_p13, %p1565_p8 }
 0x12c   : > { %1575 = shalt.err (!%p1572_p0)
}
 0x12d   : > { %s1645_s22 = smov 64   ;;  %s1646_s23 = smov 4  }
 0x12e   : > { %1500 = dma.vmem_to_hbm [thread:$0]  (%p1728_p5), %s1883_s17, 1024, %s1881_s19, %s1044_s21, %s1645_s22, %s1645_s22, %s1646_s23  }
 0x12f   : > { %s1189_s29 = sshll.u32 %s1844_s8, 7  ;;  %s1285_s17 = sshll.u32 %s1711_s28, 11 }
 0x130   : > { %s1910_s9 = scalar_lea.vmem [#allocation4], %s1189_s29  ;;  %s1931_s14 = scalar_lea.hbm %s1985_s7, %s1285_s17 }
 0x131   : > { %s1078_s19 = sshll.u32 %s1910_s9, 4  ;;  %s1049_s15 = scalar_lea.sflag [#allocation5], %s1844_s8  ;;  %s1933_s19 = int_to_ptr.vmem [resolvable:$true] %s1078_s19 }
 0x132   : > { %s1576_s28 = scalar_lea.vmem %s1933_s19, 2048  ;;  %s1647_s16 = smov [#allocation4]  }
 0x133   : > { %p1577_p1 = scmp.ne.s32.totalorder %s1933_s19, %s1576_s28  ;;  %s1580_s18 = sshll.u32 %s1647_s16, 4  ;;  %s1581_s18 = int_to_ptr.vmem [resolvable:$false] %s1580_s18 }
 0x134   : > { %s1582_s20 = scalar_lea.vmem %s1581_s18, 4096  ;;  %p1583_p4 = scmp.lt.s32.totalorder %s1933_s19, %s1581_s18 }
 0x135   : > { %p1578_p2 = pnand %p1577_p1, %p1728_p5  ;;  %p1584_p7 = scmp.lt.s32.totalorder %s1582_s20, %s1576_s28 }
 0x137   : > { %p1579_p3 = pneg %p1578_p2  ;;  %p1585_p8 = por %p1584_p7, %p1583_p4 }
 0x139   : > { %p1586_p9 = pnand %p1585_p8, %p1579_p3 }
 0x1d7   : > { %v1458_v38 = vpop.f32.mrb[8].mxu0 }
 0x1d8   : > { %1028 = vst [vmem:[%s1910_s9 + $0x8] sm:$0xff] %v1458_v38  ;;  %v948_v39 = vpop.f32.mrb[9].mxu0 }
 0x1d9   : > { %1027 = vst [vmem:[%s1910_s9] sm:$0xff] %v948_v39 }
 0x1db   : > { %v1461_v40 = vpop.f32.mrb[10].mxu0 }
 0x1dc   : > { %1030 = vst [vmem:[%s1910_s9 + $0x18] sm:$0xff] %v1461_v40  ;;  %v958_v41 = vpop.f32.mrb[11].mxu0 }
 0x1dd   : > { %1029 = vst [vmem:[%s1910_s9 + $0x10] sm:$0xff] %v958_v41 }
 0x1df   : > { %v1464_v42 = vpop.f32.mrb[12].mxu0 }
 0x1e0   : > { %1032 = vst [vmem:[%s1910_s9 + $0x28] sm:$0xff] %v1464_v42  ;;  %v968_v43 = vpop.f32.mrb[13].mxu0 }
 0x1e1   : > { %1031 = vst [vmem:[%s1910_s9 + $0x20] sm:$0xff] %v968_v43 }
 0x1e3   : > { %v1467_v44 = vpop.f32.mrb[14].mxu0 }
 0x1e4   : > { %1034 = vst [vmem:[%s1910_s9 + $0x38] sm:$0xff] %v1467_v44  ;;  %v978_v45 = vpop.f32.mrb[15].mxu0 }
 0x1e5   : > { %1033 = vst [vmem:[%s1910_s9 + $0x30] sm:$0xff] %v978_v45 }
 0x1e7   : > { %v1470_v46 = vpop.f32.mrb[16].mxu0 }
 0x1e8   : > { %1036 = vst [vmem:[%s1910_s9 + $0x48] sm:$0xff] %v1470_v46  ;;  %v988_v47 = vpop.f32.mrb[17].mxu0 }
 0x1e9   : > { %1035 = vst [vmem:[%s1910_s9 + $0x40] sm:$0xff] %v988_v47 }
 0x1eb   : > { %v1473_v48 = vpop.f32.mrb[18].mxu0 }
 0x1ec   : > { %1038 = vst [vmem:[%s1910_s9 + $0x58] sm:$0xff] %v1473_v48  ;;  %v998_v49 = vpop.f32.mrb[19].mxu0 }
 0x1ed   : > { %1037 = vst [vmem:[%s1910_s9 + $0x50] sm:$0xff] %v998_v49 }
 0x1ef   : > { %v1476_v50 = vpop.f32.mrb[20].mxu0 }
 0x1f0   : > { %1040 = vst [vmem:[%s1910_s9 + $0x68] sm:$0xff] %v1476_v50  ;;  %v1008_v51 = vpop.f32.mrb[21].mxu0 }
 0x1f1   : > { %1039 = vst [vmem:[%s1910_s9 + $0x60] sm:$0xff] %v1008_v51 }
 0x1f3   : > { %v1479_v52 = vpop.f32.mrb[22].mxu0 }
 0x1f4   : > { %1042 = vst [vmem:[%s1910_s9 + $0x78] sm:$0xff] %v1479_v52  ;;  %v1018_v53 = vpop.f32.mrb[23].mxu0 }
 0x1f5   : > { %1041 = vst [vmem:[%s1910_s9 + $0x70] sm:$0xff] %v1018_v53 }
 0x1f6   : > { %1589 = shalt.err (!%p1586_p9)
}
 0x1f7   : > { %s1590_s22 = scalar_lea.hbm %s1931_s14, 2048  ;;  %s1594_s9 = scalar_lea.hbm %s1985_s7, 4096 }
 0x1f8   : > { %p1591_p10 = scmp.ne.s32.totalorder %s1931_s14, %s1590_s22  ;;  %p1595_p13 = scmp.lt.u32.totalorder %s1931_s14, %s1985_s7 }
 0x1f9   : > { %p1596_p0 = scmp.lt.u32.totalorder %s1594_s9, %s1590_s22  ;;  %p1598_p2 = scmp.lt.u32.totalorder %s1590_s22, %s1931_s14 }
 0x1fa   : > { %p1592_p11 = pnand %p1591_p10, %p1728_p5 }
 0x1fb   : > { %p1597_p1 = por %p1596_p0, %p1595_p13 }
 0x1fc   : > { %p1593_p12 = pneg %p1592_p11 }
 0x1fd   : > { %p1599_p3 = por %p1598_p2, %p1597_p1 }
 0x1ff   : > { %p1600_p4 = pnand %p1599_p3, %p1593_p12 }
 0x201   : > { %1603 = shalt.err (!%p1600_p4)
}
 0x202   : > { %s1648_s13 = smov 128   ;;  %s1649_s28 = smov 8  }
 0x203   : > { %1501 = dma.vmem_to_hbm [thread:$0]  (%p1728_p5), %s1933_s19, 2048, %s1931_s14, %s1049_s15, %s1648_s13, %s1648_s13, %s1649_s28  }
 0x204 PF: > { %p1511_p7 = scmp.ge.s32.totalorder %s1642_s27, 2  ;;  %s1093_s16 = sand.u32 1, %s1630_s24  }
 0x205   : > { %s1094_s18 = scalar_lea.sflag [#allocation3], %s1093_s16 }
 0x206   : > { %p1505_p8 = pnand %p1511_p7, %p1732_p6 }
 0x208   : > { %1621 = dma.done.wait (!%p1505_p8), %s1094_s18, 1024  }
 0x209   : > { %1623 = vsyncadd (!%p1505_p8), %s1094_s18, 4294966272  ;;  %s1103_s20 = scalar_lea.sflag [#allocation5], %s1093_s16 }
 0x20a   : > { %1625 = dma.done.wait (!%p1505_p8), %s1103_s20, 2048  }
 0x20b   : > { %1627 = vsyncadd (!%p1505_p8), %s1103_s20, 4294965248  ;;  %p21_p5 = scmp.ge.s32.totalorder %s1715_s30, 4   ;;  %s1988_s24 = smov %s1634_s25 }
 0x20c   : > { %s1989_s25 = smov %s1638_s26  ;;  %s1990_s26 = smov %s1726_s10 }
 0x20d   : > { %s1991_s27 = smov %s1715_s30  ;;  %23 = sbr.rel (!%p21_p5) target bundleno = 5 (0x5), region = 99 }
 0x214   :  { %1108 = vsyncpa [#allocation3], 1 }
 0x215   :  { %1110 = vsyncpa [#allocation3 + $0x1], 1 }
 0x216   :  { %1111 = vsyncpa [#allocation5], 1 }
 0x217   :  { %1113 = vsyncpa [#allocation5 + $0x1], 1 }

</bundles_post_ra>
